<compile_context>
chip_gen: v6e
topology: v6e:2x2x1
jax: 0.10.0
libtpu: 0.0.40
codegen_flags: <defaults>
</compile_context>

<pallas_src>
import functools

import jax
import jax.numpy as jnp
from jax.experimental import pallas as pl
from jax.experimental.pallas import tpu as pltpu


# ----------------------------- helpers ------------------------------------- #

def _round_up(x, m):
    return (x + m - 1) // m * m


def _half_tile(t):
    """Halve a tile size, keeping it a multiple of 128 and >= 128."""
    return max(128, _round_up(t // 2, 128))


def _detect_tpu():
    """(physical VMEM bytes, dual-TensorCore?, device-kind string)."""
    kind = ""
    try:
        kind = jax.devices()[0].device_kind.lower()
    except Exception:
        pass
    vmem = None
    try:
        vmem = int(pltpu.get_tpu_info().vmem_capacity_bytes)
    except Exception:
        vmem = None
    if vmem is None:
        vmem = (64 if "v7" in kind else 128) * 1024 * 1024
    dual_core = "v7" in kind
    return vmem, dual_core, kind


_VMEM_BYTES, _DUAL_CORE, _KIND = _detect_tpu()
_BIG_VMEM = _VMEM_BYTES >= 96 * 1024 * 1024
# v6e needs ~680 flops per streamed weight byte (918 TF/s / ~1.35 TB/s HBM)
# => TM >= 1024 to stay MXU-bound; v5e (~240) and v7x (~310) are fine at 512.
_TM_CAP = 1024 if (_BIG_VMEM and "v6" in _KIND) else 512
_TF_CAP = 1024
_VMEM_BUDGET = (100 if _BIG_VMEM else 44) * 1024 * 1024


def _vmem_estimate(tm, tf, d_model_p, param_bytes, out_bytes):
    """Rough per-kernel VMEM footprint: double-buffered pipeline tiles + acc."""
    x_t = 2 * tm * d_model_p * param_bytes           # x tile (dbuf)
    w1_t = 2 * d_model_p * tf * param_bytes          # w1 panel (dbuf)
    w2_t = 2 * tf * d_model_p * param_bytes          # w2 panel (dbuf)
    b_t = 2 * (tf + d_model_p) * 4                   # biases (dbuf, f32)
    acc_t = tm * d_model_p * 4                       # f32 accumulator scratch
    out_t = 2 * tm * d_model_p * out_bytes           # output tile (dbuf)
    return x_t + w1_t + w2_t + b_t + acc_t + out_t


# ------------------------------ kernel ------------------------------------- #

def ffn_kernel(x_ref, w1_ref, b1_ref, w2_ref, b2_ref, o_ref, acc_ref):
    f = pl.program_id(1)

    @pl.when(f == 0)
    def _init():
        acc_ref[...] = jnp.zeros_like(acc_ref)

    # linear1 (bf16 operands, f32 MXU accumulation) + bias + ReLU on this panel.
    h = jnp.dot(x_ref[...], w1_ref[...], preferred_element_type=jnp.float32)
    h = jnp.maximum(h + b1_ref[...], 0.0)
    # Dropout == identity (eval mode).

    # linear2: reduce this d_ff panel into the resident f32 accumulator.
    acc_ref[...] += jnp.dot(h.astype(w2_ref.dtype), w2_ref[...],
                            preferred_element_type=jnp.float32)

    @pl.when(f == pl.num_programs(1) - 1)
    def _finalize():
        # b2 added exactly once; cast to the final output dtype here so no
        # extra wrapper-side cast pass over the output is needed.
        o_ref[...] = (acc_ref[...] + b2_ref[...]).astype(o_ref.dtype)


# --------------------------- wrapper / plumbing ----------------------------- #

def prepare_ffn_params(w1, b1, w2, b2, *, param_dtype=jnp.bfloat16, out_dtype=None):
    """One-time padding + cast of the FFN parameters (hoisted out of the
    per-call path) and selection of the d_ff tile TF (so d_ff_p % TF == 0).

    NOTE: param_dtype=bf16 is a deliberate precision deviation from the f32
    PyTorch reference (bf16 MXU operands, f32 accumulation). Pass
    param_dtype=jnp.float32 for full-precision matmuls.
    out_dtype=None means "match x.dtype"; pass jnp.bfloat16 to halve writeback.
    """
    d_model, d_ff = w1.shape
    assert w2.shape == (d_ff, d_model)
    d_model_p = _round_up(d_model, 128)

    param_bytes = jnp.dtype(param_dtype).itemsize
    out_bytes = jnp.dtype(out_dtype).itemsize if out_dtype is not None else 4

    # TF: as large as the VMEM budget allows assuming the largest TM this
    # generation would use (bigger TF = fewer f32 acc read-modify-writes and
    # fewer grid steps; matters most on v5e's single vst slot).
    tf = min(_TF_CAP, _round_up(d_ff, 128))
    while (_vmem_estimate(_TM_CAP, tf, d_model_p, param_bytes, out_bytes)
           > _VMEM_BUDGET and tf > 128):
        tf = _half_tile(tf)
    d_ff_p = _round_up(d_ff, tf)

    def pad2(a, shape):
        if a.shape == shape:
            return a.astype(param_dtype)
        out = jnp.zeros(shape, param_dtype)
        return out.at[:a.shape[0], :a.shape[1]].set(a.astype(param_dtype))

    w1_p = pad2(w1, (d_model_p, d_ff_p))
    w2_p = pad2(w2, (d_ff_p, d_model_p))
    b1_p = jnp.zeros((1, d_ff_p), jnp.float32).at[0, :d_ff].set(
        b1.astype(jnp.float32))
    b2_p = jnp.zeros((1, d_model_p), jnp.float32).at[0, :d_model].set(
        b2.astype(jnp.float32))

    params = dict(w1=w1_p, b1=b1_p, w2=w2_p, b2=b2_p)
    meta = dict(tf=tf, out_dtype=out_dtype)
    return params, meta


@functools.partial(jax.jit, static_argnames=("tf", "out_dtype"))
def _ffn_impl(x, w1_p, b1_p, w2_p, b2_p, *, tf, out_dtype):
    orig_shape = x.shape
    d_model = orig_shape[-1]
    x2d = x.reshape(-1, d_model)
    M = x2d.shape[0]
    d_model_p, d_ff_p = w1_p.shape
    param_dtype = w1_p.dtype
    if out_dtype is None:
        out_dtype = x.dtype
    param_bytes = jnp.dtype(param_dtype).itemsize
    out_bytes = jnp.dtype(out_dtype).itemsize

    # ---- token-tile selection (all static, trace-time shape logic) ----
    TM = min(_TM_CAP, _round_up(M, 128))
    if _DUAL_CORE and M > 128:
        # Guarantee >= 2 token tiles so the "parallel" axis shards over both TCs.
        TM = min(TM, _round_up((M + 1) // 2, 128))
    while (_vmem_estimate(TM, tf, d_model_p, param_bytes, out_bytes)
           > _VMEM_BUDGET and TM > 128):
        TM = _half_tile(TM)
    M_p = _round_up(M, TM)

    # ---- pad/cast x only if needed (fast path: already aligned) ----
    x_p = x2d.astype(param_dtype)
    if (M_p, d_model_p) != (M, d_model):
        x_p = jnp.pad(x_p, ((0, M_p - M), (0, d_model_p - d_model)))

    grid = (M_p // TM, d_ff_p // tf)
    m_tiles = grid[0]

    flops = 4 * M_p * d_model_p * d_ff_p  # two matmuls, 2*M*K*N each
    bytes_accessed = (
        M_p * d_model_p * param_bytes                        # x read once
        + m_tiles * (w1_p.size + w2_p.size) * param_bytes    # weights re-streamed per M tile
        + (b1_p.size + b2_p.size) * 4
        + M_p * d_model_p * out_bytes)                       # output written once

    out_p = pl.pallas_call(
        ffn_kernel,
        out_shape=jax.ShapeDtypeStruct((M_p, d_model_p), out_dtype),
        grid_spec=pltpu.PrefetchScalarGridSpec(
            num_scalar_prefetch=0,
            grid=grid,
            in_specs=[
                # x tile: depends on i only (resident across the f reduction).
                pl.BlockSpec((TM, d_model_p), lambda i, f: (i, 0)),
                # w1 / b1 panels: streamed along the d_ff axis.
                pl.BlockSpec((d_model_p, tf), lambda i, f: (0, f)),
                pl.BlockSpec((1, tf), lambda i, f: (0, f)),
                # w2 panel: streamed along the d_ff (reduction) axis.
                pl.BlockSpec((tf, d_model_p), lambda i, f: (f, 0)),
                # b2: constant block.
                pl.BlockSpec((1, d_model_p), lambda i, f: (0, 0)),
            ],
            # Output block index constant across f -> accumulator-resident.
            out_specs=pl.BlockSpec((TM, d_model_p), lambda i, f: (i, 0)),
            scratch_shapes=[pltpu.VMEM((TM, d_model_p), jnp.float32)],
        ),
        compiler_params=pltpu.CompilerParams(
            dimension_semantics=("parallel", "arbitrary"),
            vmem_limit_bytes=_VMEM_BUDGET,
        ),
        cost_estimate=pl.CostEstimate(
            flops=flops, transcendentals=0, bytes_accessed=bytes_accessed),
    )(x_p, w1_p, b1_p, w2_p, b2_p)

    out = out_p
    if (M_p, d_model_p) != (M, d_model):
        out = out_p[:M, :d_model]
    return out.reshape(orig_shape)


def feed_forward(x, params, meta):
    """FeedForward forward: linear1 -> ReLU -> dropout(identity, eval) -> linear2."""
    return _ffn_impl(x, params["w1"], params["b1"], params["w2"], params["b2"],
                     tf=meta["tf"], out_dtype=meta["out_dtype"])


# ------------------------------- demo -------------------------------------- #

if __name__ == "__main__":
    batch, seq, d_model, d_ff = 2, 8, 32, 64
    key = jax.random.PRNGKey(0)
    kx, kw1, kb1, kw2, kb2 = jax.random.split(key, 5)

    x = jax.random.normal(kx, (batch, seq, d_model), dtype=jnp.float32)

    # nn.Linear-equivalent parameters, stored as (in, out) so y = x @ w + b.
    w1 = jax.random.normal(kw1, (d_model, d_ff), dtype=jnp.float32) * 0.05
    b1 = jax.random.normal(kb1, (d_ff,), dtype=jnp.float32) * 0.05
    w2 = jax.random.normal(kw2, (d_ff, d_model), dtype=jnp.float32) * 0.05
    b2 = jax.random.normal(kb2, (d_model,), dtype=jnp.float32) * 0.05

    # One-time parameter prep (padding + bf16 cast hoisted out of the call path).
    params, meta = prepare_ffn_params(w1, b1, w2, b2)

    out = feed_forward(x, params, meta)
    jax.block_until_ready(out)

    # Pure-JAX f32 reference (dropout is identity in eval mode).
    x2d = x.reshape(-1, d_model)
    ref = (jnp.maximum(x2d @ w1 + b1[None, :], 0.0) @ w2 + b2[None, :]
           ).reshape(x.shape)
    out_f32 = out.astype(jnp.float32)
    err = float(jnp.max(jnp.abs(out_f32 - ref)))
    assert jnp.allclose(out_f32, ref, atol=2e-2, rtol=2e-2), err

    print("KERNEL_OK")
</pallas_src>

<mosaic_0001>
module attributes {stable_mosaic.version = 11 : i64} {
  func.func @ffn_kernel(%arg0: i32, %arg1: i32, %arg2: memref<128x128xbf16, #tpu.memory_space<vmem>>, %arg3: memref<128x128xbf16, #tpu.memory_space<vmem>>, %arg4: memref<1x128xf32, #tpu.memory_space<vmem>>, %arg5: memref<128x128xbf16, #tpu.memory_space<vmem>>, %arg6: memref<1x128xf32, #tpu.memory_space<vmem>>, %arg7: memref<128x128xf32, #tpu.memory_space<vmem>>, %arg8: memref<128x128xf32, #tpu.memory_space<vmem>>) attributes {dimension_semantics = [#tpu.dimension_semantics<parallel>, #tpu.dimension_semantics<arbitrary>], iteration_bounds = array<i64: 1, 1>, scalar_prefetch = 0 : i64, scratch_operands = 1 : i64, tpu.core_type = #tpu.core_type<tc>, window_params = [{transform_indices = @transform_0, window_bounds = array<i64: 128, 128>}, {transform_indices = @transform_1, window_bounds = array<i64: 128, 128>}, {transform_indices = @transform_2, window_bounds = array<i64: 1, 128>}, {transform_indices = @transform_3, window_bounds = array<i64: 128, 128>}, {pipeline_mode = #tpu.pipeline_mode<synchronous>, transform_indices = @transform_4, window_bounds = array<i64: 1, 128>}, {transform_indices = @transform_5, window_bounds = array<i64: 128, 128>}]} {
    %c0_i32 = arith.constant 0 : i32
    %0 = arith.cmpi eq, %arg1, %c0_i32 : i32
    %1 = arith.extui %0 : i1 to i32
    %c0_i32_0 = arith.constant 0 : i32
    %2 = arith.cmpi ne, %1, %c0_i32_0 : i32
    scf.if %2 {
      %cst_16 = arith.constant 0.000000e+00 : f32
      %20 = vector.broadcast %cst_16 : f32 to vector<128x128xf32>
      %c0_17 = arith.constant 0 : index
      %c0_18 = arith.constant 0 : index
      %21 = vector.load %arg8[%c0_17, %c0_18] : memref<128x128xf32, #tpu.memory_space<vmem>>, vector<128x128xf32>
      tpu.vector_store %arg8[%c0_17, %c0_18], %20 {strides = array<i32>} : memref<128x128xf32, #tpu.memory_space<vmem>>, vector<128x128xf32>,
    } else {
    }
    %c0 = arith.constant 0 : index
    %c0_1 = arith.constant 0 : index
    %3 = vector.load %arg2[%c0, %c0_1] : memref<128x128xbf16, #tpu.memory_space<vmem>>, vector<128x128xbf16>
    %c0_2 = arith.constant 0 : index
    %c0_3 = arith.constant 0 : index
    %4 = vector.load %arg3[%c0_2, %c0_3] : memref<128x128xbf16, #tpu.memory_space<vmem>>, vector<128x128xbf16>
    %cst = arith.constant dense<0.000000e+00> : vector<128x128xf32>
    %5 = tpu.matmul %3, %4, %cst {dimension_numbers = #tpu.dot_dimension_numbers<[1], [0], [0], [1], [0, 0, 1, 1], [], []>} : vector<128x128xbf16>, vector<128x128xbf16>, vector<128x128xf32> -> vector<128x128xf32>
    %c0_4 = arith.constant 0 : index
    %c0_5 = arith.constant 0 : index
    %6 = vector.load %arg4[%c0_4, %c0_5] : memref<1x128xf32, #tpu.memory_space<vmem>>, vector<1x128xf32>
    %7 = vector.broadcast %6 : vector<1x128xf32> to vector<128x128xf32>
    %8 = arith.addf %5, %7 : vector<128x128xf32>
    %cst_6 = arith.constant 0.000000e+00 : f32
    %9 = vector.broadcast %cst_6 : f32 to vector<128x128xf32>
    %10 = arith.maximumf %8, %9 : vector<128x128xf32>
    %c0_7 = arith.constant 0 : index
    %c0_8 = arith.constant 0 : index
    %11 = vector.load %arg8[%c0_7, %c0_8] : memref<128x128xf32, #tpu.memory_space<vmem>>, vector<128x128xf32>
    %12 = arith.truncf %10 : vector<128x128xf32> to vector<128x128xbf16>
    %c0_9 = arith.constant 0 : index
    %c0_10 = arith.constant 0 : index
    %13 = vector.load %arg5[%c0_9, %c0_10] : memref<128x128xbf16, #tpu.memory_space<vmem>>, vector<128x128xbf16>
    %cst_11 = arith.constant dense<0.000000e+00> : vector<128x128xf32>
    %14 = tpu.matmul %12, %13, %cst_11 {dimension_numbers = #tpu.dot_dimension_numbers<[1], [0], [0], [1], [0, 0, 1, 1], [], []>} : vector<128x128xbf16>, vector<128x128xbf16>, vector<128x128xf32> -> vector<128x128xf32>
    %15 = arith.addf %11, %14 : vector<128x128xf32>
    %c0_12 = arith.constant 0 : index
    %c0_13 = arith.constant 0 : index
    %16 = vector.load %arg8[%c0_12, %c0_13] : memref<128x128xf32, #tpu.memory_space<vmem>>, vector<128x128xf32>
    tpu.vector_store %arg8[%c0_12, %c0_13], %15 {strides = array<i32>} : memref<128x128xf32, #tpu.memory_space<vmem>>, vector<128x128xf32>,
    %c0_i32_14 = arith.constant 0 : i32
    %17 = arith.cmpi eq, %arg1, %c0_i32_14 : i32
    %18 = arith.extui %17 : i1 to i32
    %c0_i32_15 = arith.constant 0 : i32
    %19 = arith.cmpi ne, %18, %c0_i32_15 : i32
    scf.if %19 {
      %c0_16 = arith.constant 0 : index
      %c0_17 = arith.constant 0 : index
      %20 = vector.load %arg8[%c0_16, %c0_17] : memref<128x128xf32, #tpu.memory_space<vmem>>, vector<128x128xf32>
      %c0_18 = arith.constant 0 : index
      %c0_19 = arith.constant 0 : index
      %21 = vector.load %arg6[%c0_18, %c0_19] : memref<1x128xf32, #tpu.memory_space<vmem>>, vector<1x128xf32>
      %22 = vector.broadcast %21 : vector<1x128xf32> to vector<128x128xf32>
      %23 = arith.addf %20, %22 : vector<128x128xf32>
      %c0_20 = arith.constant 0 : index
      %c0_21 = arith.constant 0 : index
      %24 = vector.load %arg7[%c0_20, %c0_21] : memref<128x128xf32, #tpu.memory_space<vmem>>, vector<128x128xf32>
      tpu.vector_store %arg7[%c0_20, %c0_21], %23 {strides = array<i32>} : memref<128x128xf32, #tpu.memory_space<vmem>>, vector<128x128xf32>,
    } else {
    }
    return
  }
  func.func @transform_0(%arg0: i32, %arg1: i32) -> (i32, i32) {
    %c0_i32 = arith.constant 0 : i32
    %c0_i32_0 = arith.constant 0 : i32
    return %arg0, %c0_i32 : i32, i32
  }
  func.func @transform_1(%arg0: i32, %arg1: i32) -> (i32, i32) {
    %c0_i32 = arith.constant 0 : i32
    %c0_i32_0 = arith.constant 0 : i32
    return %c0_i32, %arg1 : i32, i32
  }
  func.func @transform_2(%arg0: i32, %arg1: i32) -> (i32, i32) {
    %c0_i32 = arith.constant 0 : i32
    %c0_i32_0 = arith.constant 0 : i32
    return %c0_i32, %arg1 : i32, i32
  }
  func.func @transform_3(%arg0: i32, %arg1: i32) -> (i32, i32) {
    %c0_i32 = arith.constant 0 : i32
    %c0_i32_0 = arith.constant 0 : i32
    return %arg1, %c0_i32 : i32, i32
  }
  func.func @transform_4(%arg0: i32, %arg1: i32) -> (i32, i32) {
    %c0_i32 = arith.constant 0 : i32
    %c0_i32_0 = arith.constant 0 : i32
    %c0_i32_1 = arith.constant 0 : i32
    return %c0_i32, %c0_i32_0 : i32, i32
  }
  func.func @transform_5(%arg0: i32, %arg1: i32) -> (i32, i32) {
    %c0_i32 = arith.constant 0 : i32
    %c0_i32_0 = arith.constant 0 : i32
    return %arg0, %c0_i32 : i32, i32
  }
}

</mosaic_0001>

<bundles_post_ra>
// kernel: _ffn_impl.1
= control target key start
LH: loop header
LB: loop body
LE: loop exit
PB: predicated region body
PF: predicated region fallthrough
CT: control target
= control target key end

     0   :  { %10 = vsyncpa [#allocation4], 0  ;;  %s754_s18 = smov [#allocation3]   ;;  %s892_s0 = inlined_call_operand.vmem [shape: bf16[128,128], index: 0, kind: input, shape index: {}]   ;;  %s893_s1 = inlined_call_operand.vmem [shape: bf16[128,128], index: 1, kind: input, shape index: {}]   ;;  %s894_s2 = inlined_call_operand.vmem [shape: f32[1,128], index: 2, kind: input, shape index: {}]   ;;  %s895_s3 = inlined_call_operand.hbm [shape: bf16[128,128], index: 3, kind: input, shape index: {}]   ;;  %s896_s4 = inlined_call_operand.vmem [shape: f32[1,128], index: 4, kind: input, shape index: {}]   ;;  %s897_s5 = inlined_call_operand.vmem [shape: f32[128,128], index: 5, kind: output, shape index: {}]  }
   0x1   :  { %s22_s19 = sshll.u32 %s754_s18, 4  ;;  %s23_s19 = int_to_ptr.vmem [resolvable:$true] %s22_s19 }
   0x2   :  { %s740_s20 = scalar_lea.vmem %s23_s19, 1024  ;;  %p745_p1 = scmp.lt.s32.totalorder %s23_s19, %s23_s19 }
   0x3   :  { %p741_p0 = scmp.ne.s32.totalorder %s23_s19, %s740_s20  ;;  %p746_p2 = scmp.lt.s32.totalorder %s740_s20, %s740_s20 }
   0x5   :  { %p747_p3 = por %p746_p2, %p745_p1 }
   0x7   :  { %p748_p4 = pnand %p747_p3, %p741_p0 }
   0x9   :  { %751 = shalt.err (!%p748_p4)
}
   0xa   :  { %s755_s21 = smov 64   ;;  %s756_s22 = smov 4  }
   0xb   :  { %28 = dma.hbm_to_vmem [thread:$0]  %s895_s3, 1024, %s23_s19, [#allocation4], %s755_s21, %s755_s21, %s756_s22  }
   0xc   :  { %752 = dma.done.wait [#allocation4], 1024  }
   0xd   :  { %753 = vsyncadd [#allocation4], 4294966272  ;;  %v708_v0 = vld [vmem:[%s893_s1 + $0x38] sm:$0xff]   ;;  %v709_v1 = vld [vmem:[%s893_s1 + $0x30] sm:$0xff]  }
   0xe   :  { %641 = vmatprep.subr.bf16.mxu0 %v708_v0  ;;  %v710_v2 = vld [vmem:[%s893_s1 + $0x28] sm:$0xff]   ;;  %v711_v3 = vld [vmem:[%s893_s1 + $0x20] sm:$0xff]   ;;  %v712_v5 = vld [vmem:[%s893_s1 + $0x18] sm:$0xff]  }
   0xf   :  { %642 = vmatpush3.bf16.msra.mxu0 %v708_v0  ;;  %v716_v4 = vld [vmem:[%s892_s0] sm:$0xff]   ;;  %v713_v6 = vld [vmem:[%s893_s1 + $0x10] sm:$0xff]   ;;  %v724_v7 = vld [vmem:[#allocation3 + $0x38] sm:$0xff]  }
  0x10   :  { %643 = vmatprep.subr.bf16.mxu0 %v709_v1  ;;  %657 = vmatprep.mubr.bf16.mxu0 %v716_v4  ;;  %v725_v8 = vld [vmem:[#allocation3 + $0x30] sm:$0xff]   ;;  %v714_v9 = vld [vmem:[%s893_s1 + $0x8] sm:$0xff]   ;;  %v715_v11 = vld [vmem:[%s893_s1] sm:$0xff]  }
  0x11   :  { %673 = vmatprep.subr.bf16.mxu1 %v724_v7  ;;  %v726_v10 = vld [vmem:[#allocation3 + $0x28] sm:$0xff]   ;;  %v727_v12 = vld [vmem:[#allocation3 + $0x20] sm:$0xff]   ;;  %v728_v13 = vld [vmem:[#allocation3 + $0x18] sm:$0xff]  }
  0x12   :  { %674 = vmatpush3.bf16.msra.mxu1 %v724_v7  ;;  %v717_v14 = vld [vmem:[%s892_s0 + $0x8] sm:$0xff]   ;;  %v718_v15 = vld [vmem:[%s892_s0 + $0x10] sm:$0xff]   ;;  %v719_v16 = vld [vmem:[%s892_s0 + $0x18] sm:$0xff]  }
  0x13   :  { %644 = vmatpush3.bf16.msra.mxu0 %v709_v1  ;;  %675 = vmatprep.subr.bf16.mxu1 %v725_v8  ;;  %v720_v17 = vld [vmem:[%s892_s0 + $0x20] sm:$0xff]   ;;  %v721_v18 = vld [vmem:[%s892_s0 + $0x28] sm:$0xff]   ;;  %v722_v19 = vld [vmem:[%s892_s0 + $0x30] sm:$0xff]  }
  0x14   :  { %645 = vmatprep.subr.bf16.mxu0 %v710_v2  ;;  %v723_v20 = vld [vmem:[%s892_s0 + $0x38] sm:$0xff]   ;;  %v729_v21 = vld [vmem:[#allocation3 + $0x10] sm:$0xff]   ;;  %v730_v22 = vld [vmem:[#allocation3 + $0x8] sm:$0xff]  }
  0x15   :  { %v731_v23 = vld [vmem:[#allocation3] sm:$0xff]  }
  0x16   :  { %676 = vmatpush3.bf16.msra.mxu1 %v725_v8  ;;  %v583_v26 = vld [vmem:[%s894_s2] ss:$0 sm:$0xff] }
  0x17   :  { %646 = vmatpush3.bf16.msra.mxu0 %v710_v2  ;;  %677 = vmatprep.subr.bf16.mxu1 %v726_v10 }
  0x18   :  { %647 = vmatprep.subr.bf16.mxu0 %v711_v3 }
  0x1a   :  { %678 = vmatpush3.bf16.msra.mxu1 %v726_v10 }
  0x1b   :  { %648 = vmatpush3.bf16.msra.mxu0 %v711_v3  ;;  %679 = vmatprep.subr.bf16.mxu1 %v727_v12 }
  0x1c   :  { %649 = vmatprep.subr.bf16.mxu0 %v712_v5 }
  0x1e   :  { %680 = vmatpush3.bf16.msra.mxu1 %v727_v12 }
  0x1f   :  { %650 = vmatpush3.bf16.msra.mxu0 %v712_v5  ;;  %681 = vmatprep.subr.bf16.mxu1 %v728_v13 }
  0x20   :  { %651 = vmatprep.subr.bf16.mxu0 %v713_v6 }
  0x22   :  { %682 = vmatpush3.bf16.msra.mxu1 %v728_v13 }
  0x23   :  { %652 = vmatpush3.bf16.msra.mxu0 %v713_v6  ;;  %683 = vmatprep.subr.bf16.mxu1 %v729_v21 }
  0x24   :  { %653 = vmatprep.subr.bf16.mxu0 %v714_v9 }
  0x26   :  { %684 = vmatpush3.bf16.msra.mxu1 %v729_v21 }
  0x27   :  { %654 = vmatpush3.bf16.msra.mxu0 %v714_v9  ;;  %685 = vmatprep.subr.bf16.mxu1 %v730_v22 }
  0x28   :  { %655 = vmatprep.subr.bf16.mxu0 %v715_v11 }
  0x2a   :  { %686 = vmatpush3.bf16.msra.mxu1 %v730_v22 }
  0x2b   :  { %656 = vmatpush3.bf16.msra.mxu0 %v715_v11  ;;  %687 = vmatprep.subr.bf16.mxu1 %v731_v23 }
  0x2e   :  { %658 = vmatmul.mubr.bf16.vlgmr.msra.gmra.mxu0 %v717_v14  ;;  %688 = vmatpush3.bf16.msra.mxu1 %v731_v23 }
  0x2f   :  { %661 = vmatprep.mubr.bf16.mxu0 %v718_v15 }
  0x36   :  { %662 = vmatmul.mubr.bf16.gmra.mxu0 %v719_v16 }
  0x37   :  { %665 = vmatprep.mubr.bf16.mxu0 %v720_v17  ;;  %v608_v17 = vld [vmem:[%s896_s4] ss:$0 sm:$0xff] }
  0x3e   :  { %666 = vmatmul.mubr.bf16.gmra.mxu0 %v721_v18 }
  0x3f   :  { %669 = vmatprep.mubr.bf16.mxu0 %v722_v19 }
  0x46   :  { %670 = vmatmul.mubr.bf16.gmra.mxu0 %v723_v20 }
  0xee   :  { %v659_v24 = vpop.f32.mrf.mxu0 }
  0xef   :  { %v233_v30 = vadd.f32 %v659_v24, %v583_v26 }
  0xf0   :  { %v224_v25 = vpop.f32.mrf.mxu0 }
  0xf1   :  { %v225_v28 = vadd.f32 %v583_v26, %v224_v25  ;;  %v289_v37 = vmax.f32 %v233_v30, 0.0 }
  0xf2   :  { %v660_v27 = vpop.f32.mrf.mxu0 }
  0xf3   :  { %v236_v29 = vadd.f32 %v660_v27, %v583_v26  ;;  %v287_v35 = vmax.f32 %v225_v28, 0.0 }
  0xf4   :  { %v227_v31 = vpop.f32.mrf.mxu0 }
  0xf5   :  { %v228_v32 = vadd.f32 %v583_v26, %v227_v31  ;;  %v290_v33 = vmax.f32 %v236_v29, 0.0 }
  0xf6   :  { %v663_v34 = vpop.f32.mrf.mxu0 }
  0xf7   :  { %v288_v36 = vmax.f32 %v228_v32, 0.0  ;;  %v320_v40 = vpack.c.bf16 %v290_v33, %v289_v37  ;;  %v249_v44 = vadd.f32 %v663_v34, %v583_v26 }
  0xf8   :  { %v240_v38 = vpop.f32.mrf.mxu0 }
  0xf9   :  { %v319_v39 = vpack.c.bf16 %v288_v36, %v287_v35  ;;  %v241_v42 = vadd.f32 %v583_v26, %v240_v38  ;;  %v293_v51 = vmax.f32 %v249_v44, 0.0 }
  0xfa   :  { %v664_v41 = vpop.f32.mrf.mxu0 }
  0xfb   :  { %v252_v43 = vadd.f32 %v664_v41, %v583_v26  ;;  %689 = vmatprep.mubr.bf16.mxu1 %v319_v39  ;;  %v291_v49 = vmax.f32 %v241_v42, 0.0 }
  0xfc   :  { %v243_v45 = vpop.f32.mrf.mxu0  ;;  %690 = vmatmul.mubr.bf16.vlgmr.msra.gmra.mxu1 %v320_v40 }
  0xfd   :  { %v244_v46 = vadd.f32 %v583_v26, %v243_v45  ;;  %v294_v47 = vmax.f32 %v252_v43, 0.0 }
  0xfe   :  { %v667_v48 = vpop.f32.mrf.mxu0 }
  0xff   :  { %v292_v50 = vmax.f32 %v244_v46, 0.0  ;;  %v322_v54 = vpack.c.bf16 %v294_v47, %v293_v51  ;;  %v265_v58 = vadd.f32 %v667_v48, %v583_v26 }
 0x100   :  { %v256_v52 = vpop.f32.mrf.mxu0 }
 0x101   :  { %v321_v53 = vpack.c.bf16 %v292_v50, %v291_v49  ;;  %v257_v56 = vadd.f32 %v583_v26, %v256_v52  ;;  %v297_v1 = vmax.f32 %v265_v58, 0.0 }
 0x102   :  { %v668_v55 = vpop.f32.mrf.mxu0 }
 0x103   :  { %v268_v57 = vadd.f32 %v668_v55, %v583_v26  ;;  %693 = vmatprep.mubr.bf16.mxu1 %v321_v53  ;;  %v295_v63 = vmax.f32 %v257_v56, 0.0 }
 0x104   :  { %v259_v59 = vpop.f32.mrf.mxu0  ;;  %694 = vmatmul.mubr.bf16.gmra.mxu1 %v322_v54 }
 0x105   :  { %v260_v60 = vadd.f32 %v583_v26, %v259_v59  ;;  %v298_v61 = vmax.f32 %v268_v57, 0.0 }
 0x106   :  { %v671_v62 = vpop.f32.mrf.mxu0 }
 0x107   :  { %v296_v0 = vmax.f32 %v260_v60, 0.0  ;;  %v324_v4 = vpack.c.bf16 %v298_v61, %v297_v1  ;;  %v281_v8 = vadd.f32 %v671_v62, %v583_v26 }
 0x108   :  { %v272_v2 = vpop.f32.mrf.mxu0 }
 0x109   :  { %v323_v3 = vpack.c.bf16 %v296_v0, %v295_v63  ;;  %v273_v6 = vadd.f32 %v583_v26, %v272_v2  ;;  %v301_v14 = vmax.f32 %v281_v8, 0.0 }
 0x10a   :  { %v672_v5 = vpop.f32.mrf.mxu0 }
 0x10b   :  { %v284_v7 = vadd.f32 %v672_v5, %v583_v26  ;;  %697 = vmatprep.mubr.bf16.mxu1 %v323_v3  ;;  %v299_v12 = vmax.f32 %v273_v6, 0.0 }
 0x10c   :  { %v275_v9 = vpop.f32.mrf.mxu0  ;;  %698 = vmatmul.mubr.bf16.gmra.mxu1 %v324_v4 }
 0x10d   :  { %v276_v10 = vadd.f32 %v583_v26, %v275_v9  ;;  %v302_v11 = vmax.f32 %v284_v7, 0.0 }
 0x10f   :  { %v300_v13 = vmax.f32 %v276_v10, 0.0  ;;  %v326_v16 = vpack.c.bf16 %v302_v11, %v301_v14 }
 0x111   :  { %v325_v15 = vpack.c.bf16 %v300_v13, %v299_v12 }
 0x113   :  { %701 = vmatprep.mubr.bf16.mxu1 %v325_v15 }
 0x114   :  { %702 = vmatmul.mubr.bf16.gmra.mxu1 %v326_v16 }
 0x1bc   :  { %v691_v18 = vpop.f32.mrf.mxu1 }
 0x1bd   :  { %v548_v19 = vadd.f32 %v691_v18, %v608_v17 }
 0x1be   :  { %v425_v20 = vpop.f32.mrf.mxu1 }
 0x1bf   :  { %564 = vst [vmem:[%s897_s5 + $0x10] sm:$0xff] %v548_v19  ;;  %v546_v21 = vadd.f32 %v608_v17, %v425_v20 }
 0x1c0   :  { %v692_v22 = vpop.f32.mrf.mxu1 }
 0x1c1   :  { %562 = vst [vmem:[%s897_s5] sm:$0xff] %v546_v21  ;;  %v549_v23 = vadd.f32 %v692_v22, %v608_v17 }
 0x1c2   :  { %v428_v24 = vpop.f32.mrf.mxu1 }
 0x1c3   :  { %565 = vst [vmem:[%s897_s5 + $0x18] sm:$0xff] %v549_v23  ;;  %v547_v25 = vadd.f32 %v608_v17, %v428_v24 }
 0x1c4   :  { %v695_v26 = vpop.f32.mrf.mxu1 }
 0x1c5   :  { %563 = vst [vmem:[%s897_s5 + $0x8] sm:$0xff] %v547_v25  ;;  %v552_v27 = vadd.f32 %v695_v26, %v608_v17 }
 0x1c6   :  { %v441_v28 = vpop.f32.mrf.mxu1 }
 0x1c7   :  { %568 = vst [vmem:[%s897_s5 + $0x30] sm:$0xff] %v552_v27  ;;  %v550_v29 = vadd.f32 %v608_v17, %v441_v28 }
 0x1c8   :  { %v696_v30 = vpop.f32.mrf.mxu1 }
 0x1c9   :  { %566 = vst [vmem:[%s897_s5 + $0x20] sm:$0xff] %v550_v29  ;;  %v553_v31 = vadd.f32 %v696_v30, %v608_v17 }
 0x1ca   :  { %v444_v32 = vpop.f32.mrf.mxu1 }
 0x1cb   :  { %569 = vst [vmem:[%s897_s5 + $0x38] sm:$0xff] %v553_v31  ;;  %v551_v33 = vadd.f32 %v608_v17, %v444_v32 }
 0x1cc   :  { %v699_v34 = vpop.f32.mrf.mxu1 }
 0x1cd   :  { %567 = vst [vmem:[%s897_s5 + $0x28] sm:$0xff] %v551_v33  ;;  %v556_v35 = vadd.f32 %v699_v34, %v608_v17 }
 0x1ce   :  { %v457_v36 = vpop.f32.mrf.mxu1 }
 0x1cf   :  { %572 = vst [vmem:[%s897_s5 + $0x50] sm:$0xff] %v556_v35  ;;  %v554_v37 = vadd.f32 %v608_v17, %v457_v36 }
 0x1d0   :  { %v700_v38 = vpop.f32.mrf.mxu1 }
 0x1d1   :  { %570 = vst [vmem:[%s897_s5 + $0x40] sm:$0xff] %v554_v37  ;;  %v557_v39 = vadd.f32 %v700_v38, %v608_v17 }
 0x1d2   :  { %v460_v40 = vpop.f32.mrf.mxu1 }
 0x1d3   :  { %573 = vst [vmem:[%s897_s5 + $0x58] sm:$0xff] %v557_v39  ;;  %v555_v41 = vadd.f32 %v608_v17, %v460_v40 }
 0x1d4   :  { %v703_v42 = vpop.f32.mrf.mxu1 }
 0x1d5   :  { %571 = vst [vmem:[%s897_s5 + $0x48] sm:$0xff] %v555_v41  ;;  %v560_v43 = vadd.f32 %v703_v42, %v608_v17 }
 0x1d6   :  { %v473_v44 = vpop.f32.mrf.mxu1 }
 0x1d7   :  { %576 = vst [vmem:[%s897_s5 + $0x70] sm:$0xff] %v560_v43  ;;  %v558_v45 = vadd.f32 %v608_v17, %v473_v44 }
 0x1d8   :  { %v704_v46 = vpop.f32.mrf.mxu1 }
 0x1d9   :  { %574 = vst [vmem:[%s897_s5 + $0x60] sm:$0xff] %v558_v45  ;;  %v561_v47 = vadd.f32 %v704_v46, %v608_v17 }
 0x1da   :  { %v476_v48 = vpop.f32.mrf.mxu1 }
 0x1db   :  { %577 = vst [vmem:[%s897_s5 + $0x78] sm:$0xff] %v561_v47  ;;  %v559_v49 = vadd.f32 %v608_v17, %v476_v48 }
 0x1dd   :  { %575 = vst [vmem:[%s897_s5 + $0x68] sm:$0xff] %v559_v49 }
 0x1de   :  { %582 = vsyncpa [#allocation4], 1 }

</bundles_post_ra>
